<compile_context>
chip_gen: v7x
topology: tpu7x:2x2x1
jax: 0.10.0
libtpu: 0.0.40
codegen_flags: <defaults>
</compile_context>

<pallas_src>
import jax
import jax.numpy as jnp
from jax.experimental import pallas as pl
from jax.experimental.pallas import tpu as pltpu

LANE = 128  # lane width / padding granularity


def _round_up(n, m):
    return (n + m - 1) // m * m


def _detect_vmem_limit_bytes():
    try:
        cap = int(pltpu.get_tpu_info().vmem_capacity_bytes)
    except Exception:
        cap = 64 * 1024 * 1024  # conservative fallback (v7x per-core VMEM)
    # ~78% of capacity, capped at 100 MiB: ~100 MiB on v5e/v6e, ~50 MiB on v7x.
    return min(int(cap * 0.78), 100 * 1024 * 1024)


VMEM_LIMIT_BYTES = _detect_vmem_limit_bytes()


def _leaky_relu(x, slope=0.01):
    # torch.nn.LeakyReLU default negative_slope = 0.01; max form = 2 VALU ops.
    return jnp.maximum(x, slope * x)


def gan_discrim_kernel(x_ref, w1_ref, b1_ref, w2_ref, b2_ref, w3_ref, b3_ref,
                       w4_ref, b4_ref, o_ref, acc_ref):
    """One batch tile: K-tiled layer-1 accumulate, then fused layers 2-4 + sigmoid."""
    k = pl.program_id(1)

    @pl.when(k == 0)
    def _():
        acc_ref[...] = jnp.zeros_like(acc_ref)

    acc_ref[...] += jnp.dot(x_ref[...], w1_ref[...],
                            preferred_element_type=jnp.float32)

    @pl.when(k == pl.num_programs(1) - 1)
    def _():
        a = _leaky_relu(acc_ref[...] + b1_ref[...])
        a = _leaky_relu(jnp.dot(a.astype(jnp.bfloat16), w2_ref[...],
                                preferred_element_type=jnp.float32) + b2_ref[...])
        a = _leaky_relu(jnp.dot(a.astype(jnp.bfloat16), w3_ref[...],
                                preferred_element_type=jnp.float32) + b3_ref[...])
        z = jnp.dot(a.astype(jnp.bfloat16), w4_ref[...],
                    preferred_element_type=jnp.float32) + b4_ref[...]
        # sigmoid via EUP exp + EUP approx reciprocal (keeps the VALU free)
        o_ref[...] = pl.reciprocal(1.0 + jnp.exp(-z), approx=True)


def _pad2d(a, rows, cols, dtype):
    a = jnp.asarray(a, dtype)
    pr, pc = rows - a.shape[0], cols - a.shape[1]
    if pr or pc:
        a = jnp.pad(a, ((0, pr), (0, pc)))
    return a


def prepare_params(params):
    """Pad to 128-lane multiples and cast ONCE (call outside the hot loop)."""
    w1, w2, w3, w4 = params["w1"], params["w2"], params["w3"], params["w4"]
    b1, b2, b3, b4 = (params[f"b{i}"].reshape(1, -1) for i in (1, 2, 3, 4))
    K, d1 = w1.shape
    d2, d3 = w2.shape[1], w3.shape[1]
    K_p = _round_up(K, LANE)
    D1, D2, D3, DO = (_round_up(d1, LANE), _round_up(d2, LANE),
                      _round_up(d3, LANE), LANE)
    return {
        "w1": _pad2d(w1, K_p, D1, jnp.bfloat16),
        "w2": _pad2d(w2, D1, D2, jnp.bfloat16),
        "w3": _pad2d(w3, D2, D3, jnp.bfloat16),
        "w4": _pad2d(w4, D3, DO, jnp.bfloat16),
        "b1": _pad2d(b1, 1, D1, jnp.float32),
        "b2": _pad2d(b2, 1, D2, jnp.float32),
        "b3": _pad2d(b3, 1, D3, jnp.float32),
        "b4": _pad2d(b4, 1, DO, jnp.float32),
    }


@jax.jit
def gan_discrim_forward(x, padded_params):
    """x: (B, C, H, W) f32; padded_params from prepare_params(). Returns (B, 1) f32."""
    B = x.shape[0]
    x2d = x.reshape(B, -1)  # == torch x.view(B, -1)
    K = x2d.shape[1]

    w1_p, w2_p, w3_p, w4_p = (padded_params[k] for k in ("w1", "w2", "w3", "w4"))
    b1_p, b2_p, b3_p, b4_p = (padded_params[k] for k in ("b1", "b2", "b3", "b4"))
    K_p, D1 = w1_p.shape
    D2, D3, DO = w2_p.shape[1], w3_p.shape[1], w4_p.shape[1]

    # ---- batch tile policy --------------------------------------------------
    B_p16 = _round_up(max(B, 1), 16)        # bf16 sublane multiple for tiny batches
    tile_b = min(256, B_p16)                # 256 rows fills the 2x256 MXU M dim
    if B_p16 // tile_b < 2 and B_p16 >= 32:
        # guarantee >=2 batch tiles so the "parallel" axis can use both v7x TCs
        tile_b = _round_up(-(-B_p16 // 2), 16)
    B_p = _round_up(B_p16, tile_b)
    n_b = B_p // tile_b

    # ---- layer-1 K tiling sized to the chip's VMEM --------------------------
    fixed = ((w2_p.size + w3_p.size + w4_p.size) * 2     # resident bf16 weights (1 buf)
             + (D1 + D2 + D3 + DO) * 4                   # resident f32 biases
             + tile_b * D1 * 4                           # layer-1 f32 accumulator
             + 2 * tile_b * DO * 4                       # double-buffered output tile
             + 8 * 1024 * 1024)                          # activations / compiler slack
    per_tk = (2 * tile_b + 2 * D1) * 2      # per-unit-K: double-buffered bf16 x + w1
    avail = max(VMEM_LIMIT_BYTES - fixed, per_tk * LANE)
    tk = min(K_p, max(LANE, (avail // per_tk) // LANE * LANE))
    n_k = -(-K_p // tk)
    tk = _round_up(-(-K_p // n_k), LANE)    # rebalance so the K axis splits evenly
    K_pp = n_k * tk

    # ---- pad x (and, rarely, w1 rows) up to the tiled shapes ----------------
    x_b = x2d.astype(jnp.bfloat16)
    if (B_p - B) or (K_pp - K):
        x_b = jnp.pad(x_b, ((0, B_p - B), (0, K_pp - K)))
    if K_pp > K_p:
        w1_p = jnp.pad(w1_p, ((0, K_pp - K_p), (0, 0)))

    def resident(shape):
        # constant index map + single buffer: DMA'd once, stays in VMEM
        return pl.BlockSpec(shape, lambda i, k: (0, 0),
                            pipeline_mode=pl.Buffered(1))

    flops = 2 * B_p * (K_pp * D1 + D1 * D2 + D2 * D3 + D3 * DO)
    bytes_accessed = (x_b.size * 2 + w1_p.size * 2
                      + (w2_p.size + w3_p.size + w4_p.size) * 2
                      + (D1 + D2 + D3 + DO) * 4
                      + B_p * DO * 4)
    cost = pl.CostEstimate(flops=flops, transcendentals=B_p * DO,
                           bytes_accessed=bytes_accessed)

    out = pl.pallas_call(
        gan_discrim_kernel,
        out_shape=jax.ShapeDtypeStruct((B_p, DO), jnp.float32),
        grid=(n_b, n_k),
        in_specs=[
            pl.BlockSpec((tile_b, tk), lambda i, k: (i, k)),   # x (batch & K tiled)
            pl.BlockSpec((tk, D1), lambda i, k: (k, 0)),       # w1 (K tiled)
            resident((1, D1)),
            resident((D1, D2)), resident((1, D2)),
            resident((D2, D3)), resident((1, D3)),
            resident((D3, DO)), resident((1, DO)),
        ],
        out_specs=pl.BlockSpec((tile_b, DO), lambda i, k: (i, 0)),
        scratch_shapes=[pltpu.VMEM((tile_b, D1), jnp.float32)],
        compiler_params=pltpu.CompilerParams(
            dimension_semantics=("parallel", "arbitrary"),
            vmem_limit_bytes=VMEM_LIMIT_BYTES,
        ),
        cost_estimate=cost,
    )(x_b, w1_p, b1_p, w2_p, b2_p, w3_p, b3_p, w4_p, b4_p)

    return out[:B, :1]  # (B, 1), real column only


def init_params(key, input_dim, linear_dim):
    """Deterministic init mimicking torch.nn.Linear default (uniform +/- 1/sqrt(fan_in)).
    Weights stored as (in_features, out_features)."""
    dims = [(input_dim, linear_dim),
            (linear_dim, 3 * linear_dim),
            (3 * linear_dim, 2 * linear_dim),
            (2 * linear_dim, 1)]
    params = {}
    for i, (fan_in, fan_out) in enumerate(dims, start=1):
        key, kw, kb = jax.random.split(key, 3)
        bound = 1.0 / (fan_in ** 0.5)
        params[f"w{i}"] = jax.random.uniform(
            kw, (fan_in, fan_out), jnp.float32, -bound, bound)
        params[f"b{i}"] = jax.random.uniform(
            kb, (1, fan_out), jnp.float32, -bound, bound)
    return params


if __name__ == "__main__":
    key = jax.random.PRNGKey(0)
    k_x, k_p = jax.random.split(key)

    # Small shapes: batch=2, channels=4, spatial=16 -> input_dim = 4*16*16 = 1024
    B, C, H, W = 2, 4, 16, 16
    input_dim = C * H * W
    linear_dim = 32

    x = jax.random.normal(k_x, (B, C, H, W), jnp.float32)
    params = init_params(k_p, input_dim, linear_dim)
    padded = prepare_params(params)   # one-time pad/cast; cache & reuse across calls

    out = gan_discrim_forward(x, padded)
    out = jax.block_until_ready(out)

    assert out.shape == (B, 1)
    assert bool(jnp.all((out >= 0.0) & (out <= 1.0)))

    # Cross-check against a plain f32 JAX reference (kernel uses bf16 matmul
    # operands with f32 accumulation, so allow a small absolute tolerance).
    def ref(x, p):
        h = x.reshape(x.shape[0], -1)

        def lin_act(h, w, b):
            z = h @ w + b
            return jnp.where(z > 0, z, 0.01 * z)

        h = lin_act(h, p["w1"], p["b1"])
        h = lin_act(h, p["w2"], p["b2"])
        h = lin_act(h, p["w3"], p["b3"])
        return jax.nn.sigmoid(h @ p["w4"] + p["b4"])

    ref_out = ref(x, params)
    assert bool(jnp.allclose(out, ref_out, atol=3e-2, rtol=0.0)), (
        f"mismatch: {out} vs {ref_out}")

    print("KERNEL_OK")
</pallas_src>

<mosaic_0001>
module attributes {stable_mosaic.version = 11 : i64} {
  func.func @gan_discrim_kernel(%arg0: i32, %arg1: i32, %arg2: memref<16x1024xbf16, #tpu.memory_space<vmem>>, %arg3: memref<1024x128xbf16, #tpu.memory_space<vmem>>, %arg4: memref<1x128xf32, #tpu.memory_space<vmem>>, %arg5: memref<128x128xbf16, #tpu.memory_space<vmem>>, %arg6: memref<1x128xf32, #tpu.memory_space<vmem>>, %arg7: memref<128x128xbf16, #tpu.memory_space<vmem>>, %arg8: memref<1x128xf32, #tpu.memory_space<vmem>>, %arg9: memref<128x128xbf16, #tpu.memory_space<vmem>>, %arg10: memref<1x128xf32, #tpu.memory_space<vmem>>, %arg11: memref<16x128xf32, #tpu.memory_space<vmem>>, %arg12: memref<16x128xf32, #tpu.memory_space<vmem>>) attributes {dimension_semantics = [#tpu.dimension_semantics<parallel>, #tpu.dimension_semantics<arbitrary>], iteration_bounds = array<i64: 1, 1>, scalar_prefetch = 0 : i64, scratch_operands = 1 : i64, tpu.core_type = #tpu.core_type<tc>, window_params = [{transform_indices = @transform_0, window_bounds = array<i64: 16, 1024>}, {transform_indices = @transform_1, window_bounds = array<i64: 1024, 128>}, {pipeline_mode = #tpu.pipeline_mode<synchronous>, transform_indices = @transform_2, window_bounds = array<i64: 1, 128>}, {pipeline_mode = #tpu.pipeline_mode<synchronous>, transform_indices = @transform_3, window_bounds = array<i64: 128, 128>}, {pipeline_mode = #tpu.pipeline_mode<synchronous>, transform_indices = @transform_4, window_bounds = array<i64: 1, 128>}, {pipeline_mode = #tpu.pipeline_mode<synchronous>, transform_indices = @transform_5, window_bounds = array<i64: 128, 128>}, {pipeline_mode = #tpu.pipeline_mode<synchronous>, transform_indices = @transform_6, window_bounds = array<i64: 1, 128>}, {pipeline_mode = #tpu.pipeline_mode<synchronous>, transform_indices = @transform_7, window_bounds = array<i64: 128, 128>}, {pipeline_mode = #tpu.pipeline_mode<synchronous>, transform_indices = @transform_8, window_bounds = array<i64: 1, 128>}, {transform_indices = @transform_9, window_bounds = array<i64: 16, 128>}]} {
    %c0_i32 = arith.constant 0 : i32
    %0 = arith.cmpi eq, %arg1, %c0_i32 : i32
    %1 = arith.extui %0 : i1 to i32
    %c0_i32_0 = arith.constant 0 : i32
    %2 = arith.cmpi ne, %1, %c0_i32_0 : i32
    scf.if %2 {
      %cst_10 = arith.constant 0.000000e+00 : f32
      %12 = vector.broadcast %cst_10 : f32 to vector<16x128xf32>
      %c0_11 = arith.constant 0 : index
      %c0_12 = arith.constant 0 : index
      %13 = vector.load %arg12[%c0_11, %c0_12] : memref<16x128xf32, #tpu.memory_space<vmem>>, vector<16x128xf32>
      tpu.vector_store %arg12[%c0_11, %c0_12], %12 {strides = array<i32>} : memref<16x128xf32, #tpu.memory_space<vmem>>, vector<16x128xf32>,
    } else {
    }
    %c0 = arith.constant 0 : index
    %c0_1 = arith.constant 0 : index
    %3 = vector.load %arg12[%c0, %c0_1] : memref<16x128xf32, #tpu.memory_space<vmem>>, vector<16x128xf32>
    %c0_2 = arith.constant 0 : index
    %c0_3 = arith.constant 0 : index
    %4 = vector.load %arg2[%c0_2, %c0_3] : memref<16x1024xbf16, #tpu.memory_space<vmem>>, vector<16x1024xbf16>
    %c0_4 = arith.constant 0 : index
    %c0_5 = arith.constant 0 : index
    %5 = vector.load %arg3[%c0_4, %c0_5] : memref<1024x128xbf16, #tpu.memory_space<vmem>>, vector<1024x128xbf16>
    %cst = arith.constant dense<0.000000e+00> : vector<16x128xf32>
    %6 = tpu.matmul %4, %5, %cst {dimension_numbers = #tpu.dot_dimension_numbers<[1], [0], [0], [1], [0, 0, 1, 1], [], []>} : vector<16x1024xbf16>, vector<1024x128xbf16>, vector<16x128xf32> -> vector<16x128xf32>
    %7 = arith.addf %3, %6 : vector<16x128xf32>
    %c0_6 = arith.constant 0 : index
    %c0_7 = arith.constant 0 : index
    %8 = vector.load %arg12[%c0_6, %c0_7] : memref<16x128xf32, #tpu.memory_space<vmem>>, vector<16x128xf32>
    tpu.vector_store %arg12[%c0_6, %c0_7], %7 {strides = array<i32>} : memref<16x128xf32, #tpu.memory_space<vmem>>, vector<16x128xf32>,
    %c0_i32_8 = arith.constant 0 : i32
    %9 = arith.cmpi eq, %arg1, %c0_i32_8 : i32
    %10 = arith.extui %9 : i1 to i32
    %c0_i32_9 = arith.constant 0 : i32
    %11 = arith.cmpi ne, %10, %c0_i32_9 : i32
    scf.if %11 {
      %c0_10 = arith.constant 0 : index
      %c0_11 = arith.constant 0 : index
      %12 = vector.load %arg12[%c0_10, %c0_11] : memref<16x128xf32, #tpu.memory_space<vmem>>, vector<16x128xf32>
      %c0_12 = arith.constant 0 : index
      %c0_13 = arith.constant 0 : index
      %13 = vector.load %arg4[%c0_12, %c0_13] : memref<1x128xf32, #tpu.memory_space<vmem>>, vector<1x128xf32>
      %14 = vector.broadcast %13 : vector<1x128xf32> to vector<16x128xf32>
      %15 = arith.addf %12, %14 : vector<16x128xf32>
      %cst_14 = arith.constant 0.00999999977 : f32
      %16 = vector.broadcast %cst_14 : f32 to vector<16x128xf32>
      %17 = arith.mulf %16, %15 : vector<16x128xf32>
      %18 = arith.maximumf %15, %17 : vector<16x128xf32>
      %19 = arith.truncf %18 : vector<16x128xf32> to vector<16x128xbf16>
      %c0_15 = arith.constant 0 : index
      %c0_16 = arith.constant 0 : index
      %20 = vector.load %arg5[%c0_15, %c0_16] : memref<128x128xbf16, #tpu.memory_space<vmem>>, vector<128x128xbf16>
      %cst_17 = arith.constant dense<0.000000e+00> : vector<16x128xf32>
      %21 = tpu.matmul %19, %20, %cst_17 {dimension_numbers = #tpu.dot_dimension_numbers<[1], [0], [0], [1], [0, 0, 1, 1], [], []>} : vector<16x128xbf16>, vector<128x128xbf16>, vector<16x128xf32> -> vector<16x128xf32>
      %c0_18 = arith.constant 0 : index
      %c0_19 = arith.constant 0 : index
      %22 = vector.load %arg6[%c0_18, %c0_19] : memref<1x128xf32, #tpu.memory_space<vmem>>, vector<1x128xf32>
      %23 = vector.broadcast %22 : vector<1x128xf32> to vector<16x128xf32>
      %24 = arith.addf %21, %23 : vector<16x128xf32>
      %cst_20 = arith.constant 0.00999999977 : f32
      %25 = vector.broadcast %cst_20 : f32 to vector<16x128xf32>
      %26 = arith.mulf %25, %24 : vector<16x128xf32>
      %27 = arith.maximumf %24, %26 : vector<16x128xf32>
      %28 = arith.truncf %27 : vector<16x128xf32> to vector<16x128xbf16>
      %c0_21 = arith.constant 0 : index
      %c0_22 = arith.constant 0 : index
      %29 = vector.load %arg7[%c0_21, %c0_22] : memref<128x128xbf16, #tpu.memory_space<vmem>>, vector<128x128xbf16>
      %cst_23 = arith.constant dense<0.000000e+00> : vector<16x128xf32>
      %30 = tpu.matmul %28, %29, %cst_23 {dimension_numbers = #tpu.dot_dimension_numbers<[1], [0], [0], [1], [0, 0, 1, 1], [], []>} : vector<16x128xbf16>, vector<128x128xbf16>, vector<16x128xf32> -> vector<16x128xf32>
      %c0_24 = arith.constant 0 : index
      %c0_25 = arith.constant 0 : index
      %31 = vector.load %arg8[%c0_24, %c0_25] : memref<1x128xf32, #tpu.memory_space<vmem>>, vector<1x128xf32>
      %32 = vector.broadcast %31 : vector<1x128xf32> to vector<16x128xf32>
      %33 = arith.addf %30, %32 : vector<16x128xf32>
      %cst_26 = arith.constant 0.00999999977 : f32
      %34 = vector.broadcast %cst_26 : f32 to vector<16x128xf32>
      %35 = arith.mulf %34, %33 : vector<16x128xf32>
      %36 = arith.maximumf %33, %35 : vector<16x128xf32>
      %37 = arith.truncf %36 : vector<16x128xf32> to vector<16x128xbf16>
      %c0_27 = arith.constant 0 : index
      %c0_28 = arith.constant 0 : index
      %38 = vector.load %arg9[%c0_27, %c0_28] : memref<128x128xbf16, #tpu.memory_space<vmem>>, vector<128x128xbf16>
      %cst_29 = arith.constant dense<0.000000e+00> : vector<16x128xf32>
      %39 = tpu.matmul %37, %38, %cst_29 {dimension_numbers = #tpu.dot_dimension_numbers<[1], [0], [0], [1], [0, 0, 1, 1], [], []>} : vector<16x128xbf16>, vector<128x128xbf16>, vector<16x128xf32> -> vector<16x128xf32>
      %c0_30 = arith.constant 0 : index
      %c0_31 = arith.constant 0 : index
      %40 = vector.load %arg10[%c0_30, %c0_31] : memref<1x128xf32, #tpu.memory_space<vmem>>, vector<1x128xf32>
      %41 = vector.broadcast %40 : vector<1x128xf32> to vector<16x128xf32>
      %42 = arith.addf %39, %41 : vector<16x128xf32>
      %cst_32 = arith.constant 0.000000e+00 : f32
      %43 = vector.broadcast %cst_32 : f32 to vector<16x128xf32>
      %44 = arith.subf %43, %42 : vector<16x128xf32>
      %45 = math.exp %44 : vector<16x128xf32>
      %cst_33 = arith.constant 1.000000e+00 : f32
      %46 = vector.broadcast %cst_33 : f32 to vector<16x128xf32>
      %47 = arith.addf %46, %45 : vector<16x128xf32>
      %48 = tpu.reciprocal %47 {approx = true} : vector<16x128xf32> -> vector<16x128xf32>
      %c0_34 = arith.constant 0 : index
      %c0_35 = arith.constant 0 : index
      %49 = vector.load %arg11[%c0_34, %c0_35] : memref<16x128xf32, #tpu.memory_space<vmem>>, vector<16x128xf32>
      tpu.vector_store %arg11[%c0_34, %c0_35], %48 {strides = array<i32>} : memref<16x128xf32, #tpu.memory_space<vmem>>, vector<16x128xf32>,
    } else {
    }
    return
  }
  func.func @transform_0(%arg0: i32, %arg1: i32) -> (i32, i32) {
    %c0_i32 = arith.constant 0 : i32
    return %arg0, %arg1 : i32, i32
  }
  func.func @transform_1(%arg0: i32, %arg1: i32) -> (i32, i32) {
    %c0_i32 = arith.constant 0 : i32
    %c0_i32_0 = arith.constant 0 : i32
    return %arg1, %c0_i32 : i32, i32
  }
  func.func @transform_2(%arg0: i32, %arg1: i32) -> (i32, i32) {
    %c0_i32 = arith.constant 0 : i32
    %c0_i32_0 = arith.constant 0 : i32
    %c0_i32_1 = arith.constant 0 : i32
    return %c0_i32, %c0_i32_0 : i32, i32
  }
  func.func @transform_3(%arg0: i32, %arg1: i32) -> (i32, i32) {
    %c0_i32 = arith.constant 0 : i32
    %c0_i32_0 = arith.constant 0 : i32
    %c0_i32_1 = arith.constant 0 : i32
    return %c0_i32, %c0_i32_0 : i32, i32
  }
  func.func @transform_4(%arg0: i32, %arg1: i32) -> (i32, i32) {
    %c0_i32 = arith.constant 0 : i32
    %c0_i32_0 = arith.constant 0 : i32
    %c0_i32_1 = arith.constant 0 : i32
    return %c0_i32, %c0_i32_0 : i32, i32
  }
  func.func @transform_5(%arg0: i32, %arg1: i32) -> (i32, i32) {
    %c0_i32 = arith.constant 0 : i32
    %c0_i32_0 = arith.constant 0 : i32
    %c0_i32_1 = arith.constant 0 : i32
    return %c0_i32, %c0_i32_0 : i32, i32
  }
  func.func @transform_6(%arg0: i32, %arg1: i32) -> (i32, i32) {
    %c0_i32 = arith.constant 0 : i32
    %c0_i32_0 = arith.constant 0 : i32
    %c0_i32_1 = arith.constant 0 : i32
    return %c0_i32, %c0_i32_0 : i32, i32
  }
  func.func @transform_7(%arg0: i32, %arg1: i32) -> (i32, i32) {
    %c0_i32 = arith.constant 0 : i32
    %c0_i32_0 = arith.constant 0 : i32
    %c0_i32_1 = arith.constant 0 : i32
    return %c0_i32, %c0_i32_0 : i32, i32
  }
  func.func @transform_8(%arg0: i32, %arg1: i32) -> (i32, i32) {
    %c0_i32 = arith.constant 0 : i32
    %c0_i32_0 = arith.constant 0 : i32
    %c0_i32_1 = arith.constant 0 : i32
    return %c0_i32, %c0_i32_0 : i32, i32
  }
  func.func @transform_9(%arg0: i32, %arg1: i32) -> (i32, i32) {
    %c0_i32 = arith.constant 0 : i32
    %c0_i32_0 = arith.constant 0 : i32
    return %arg0, %c0_i32 : i32, i32
  }
}

</mosaic_0001>

<bundles_post_ra>
// kernel: gan_discrim_forward.1
= control target key start
LH: loop header
LB: loop body
LE: loop exit
PB: predicated region body
PF: predicated region fallthrough
CT: control target
= control target key end

     0   :  { %14 = vsyncpa [#allocation4], 0  ;;  %s1565_s30 = smov [#allocation3]   ;;  %s1776_s0 = inlined_call_operand.vmem [shape: bf16[16,1024], index: 0, kind: input, shape index: {}]   ;;  %s1777_s1 = inlined_call_operand.hbm [shape: bf16[1024,128], index: 1, kind: input, shape index: {}]   ;;  %s1778_s2 = inlined_call_operand.vmem [shape: f32[1,128], index: 2, kind: input, shape index: {}]   ;;  %s1779_s3 = inlined_call_operand.vmem [shape: bf16[128,128], index: 3, kind: input, shape index: {}]   ;;  %s1780_s4 = inlined_call_operand.vmem [shape: f32[1,128], index: 4, kind: input, shape index: {}]   ;;  %s1781_s5 = inlined_call_operand.vmem [shape: bf16[128,128], index: 5, kind: input, shape index: {}]   ;;  %s1782_s6 = inlined_call_operand.vmem [shape: f32[1,128], index: 6, kind: input, shape index: {}]   ;;  %s1783_s7 = inlined_call_operand.vmem [shape: bf16[128,128], index: 7, kind: input, shape index: {}]   ;;  %s1784_s8 = inlined_call_operand.vmem [shape: f32[1,128], index: 8, kind: input, shape index: {}]   ;;  %s1785_s9 = inlined_call_operand.vmem [shape: f32[16,128], index: 9, kind: output, shape index: {}]  }
   0x1   :  { %s22_s10 = sshll.u32 %s1565_s30, 4  ;;  %s1541_s13 = scalar_lea.hbm %s1777_s1, 8192  ;;  %s23_s10 = int_to_ptr.vmem [resolvable:$true] %s22_s10 }
   0x2   :  { %p1542_p0 = scmp.ne.s32.totalorder %s1777_s1, %s1541_s13  ;;  %p1545_p1 = scmp.lt.u32.totalorder %s1541_s13, %s1777_s1 }
   0x4   :  { %p1547_p2 = pnand %p1545_p1, %p1542_p0 }
   0x6   :  { %1550 = shalt.err (!%p1547_p2)
}
   0x7   :  { %s1551_s18 = scalar_lea.vmem %s23_s10, 8192  ;;  %p1556_p4 = scmp.lt.s32.totalorder %s23_s10, %s23_s10 }
   0x8   :  { %p1552_p3 = scmp.ne.s32.totalorder %s23_s10, %s1551_s18  ;;  %p1557_p5 = scmp.lt.s32.totalorder %s1551_s18, %s1551_s18 }
   0xa   :  { %p1558_p6 = por %p1557_p5, %p1556_p4 }
   0xc   :  { %p1559_p7 = pnand %p1558_p6, %p1552_p3 }
   0xe   :  { %1562 = shalt.err (!%p1559_p7)
}
   0xf   :  { %s1566_s19 = smov 64   ;;  %s1567_s20 = smov 4  }
  0x10   :  { %28 = dma.hbm_to_vmem [thread:$0]  %s1777_s1, 8192, %s23_s10, [#allocation4], %s1566_s19, %s1566_s19, %s1567_s20  }
  0x11   :  { %1563 = dma.done.wait [#allocation4], 8192  }
  0x12   :  { %1564 = vsyncadd [#allocation4], 4294959104  ;;  %v1445_v0 = vld [vmem:[#allocation3 + $0x40] sm:$0xff]   ;;  %v1449_v4 = vld [vmem:[#allocation3 + $0x48] sm:$0xff]   ;;  %vm1569_vm0 = vmmov 0  }
  0x13   :  { %v1446_v1 = vld [vmem:[#allocation3 + $0xc0] sm:$0xff]   ;;  %1265 = vmatprep.subr.bf16.mxu0 %v1445_v0  ;;  %v1450_v5 = vld [vmem:[#allocation3 + $0xc8] sm:$0xff]   ;;  %v1453_v8 = vld [vmem:[#allocation3 + $0x50] sm:$0xff]  }
  0x14   :  { %v1447_v2 = vld [vmem:[#allocation3] sm:$0xff]   ;;  %1287 = vmatprep.subr.bf16.mxu1 %v1446_v1  ;;  %v1451_v6 = vld [vmem:[#allocation3 + $0x8] sm:$0xff]   ;;  %v1454_v9 = vld [vmem:[#allocation3 + $0xd0] sm:$0xff]  }
  0x15   :  { %v1448_v3 = vld [vmem:[#allocation3 + $0x80] sm:$0xff]   ;;  %1266 = vmatpush3.bf16.msra.mxu0 %v1447_v2  ;;  %v1452_v7 = vld [vmem:[#allocation3 + $0x88] sm:$0xff]   ;;  %v1455_v10 = vld [vmem:[#allocation3 + $0x10] sm:$0xff]  }
  0x16   :  { %1288 = vmatpush3.bf16.msra.mxu1 %v1448_v3  ;;  %1267 = vmatprep.subr.bf16.mxu0 %v1449_v4  ;;  %v1456_v11 = vld [vmem:[#allocation3 + $0x90] sm:$0xff]   ;;  %v1457_v12 = vld [vmem:[#allocation3 + $0x58] sm:$0xff]   ;;  %v1461_v16 = vld [vmem:[#allocation3 + $0x60] sm:$0xff]  }
  0x17   :  { %1289 = vmatprep.subr.bf16.mxu1 %v1450_v5  ;;  %v1458_v13 = vld [vmem:[#allocation3 + $0xd8] sm:$0xff]   ;;  %v1462_v17 = vld [vmem:[#allocation3 + $0xe0] sm:$0xff]   ;;  %v1465_v20 = vld [vmem:[#allocation3 + $0x68] sm:$0xff]  }
  0x18   :  { %v1459_v14 = vld [vmem:[#allocation3 + $0x18] sm:$0xff]   ;;  %v1463_v18 = vld [vmem:[#allocation3 + $0x20] sm:$0xff]   ;;  %v1466_v21 = vld [vmem:[#allocation3 + $0xe8] sm:$0xff]  }
  0x19   :  { %1268 = vmatpush3.bf16.msra.mxu0 %v1451_v6  ;;  %v1460_v15 = vld [vmem:[#allocation3 + $0x98] sm:$0xff]   ;;  %v1464_v19 = vld [vmem:[#allocation3 + $0xa0] sm:$0xff]   ;;  %v1467_v22 = vld [vmem:[#allocation3 + $0x28] sm:$0xff]  }
  0x1a   :  { %1290 = vmatpush3.bf16.msra.mxu1 %v1452_v7  ;;  %1269 = vmatprep.subr.bf16.mxu0 %v1453_v8  ;;  %v1468_v23 = vld [vmem:[#allocation3 + $0xa8] sm:$0xff]   ;;  %v1469_v24 = vld [vmem:[#allocation3 + $0x70] sm:$0xff]   ;;  %v1473_v28 = vld [vmem:[#allocation3 + $0x78] sm:$0xff]  }
  0x1b   :  { %1291 = vmatprep.subr.bf16.mxu1 %v1454_v9  ;;  %v1470_v25 = vld [vmem:[#allocation3 + $0xf0] sm:$0xff]   ;;  %v1474_v29 = vld [vmem:[#allocation3 + $0xf8] sm:$0xff]   ;;  %v55_v32 = vld [vmem:[%s1776_s0] sm:$0xff] }
  0x1c   :  { %v1471_v26 = vld [vmem:[#allocation3 + $0x30] sm:$0xff]   ;;  %v1475_v30 = vld [vmem:[#allocation3 + $0x38] sm:$0xff]   ;;  %v59_v33 = vld [vmem:[%s1776_s0 + $0x20] sm:$0xff] }
  0x1d   :  { %1270 = vmatpush3.bf16.msra.mxu0 %v1455_v10  ;;  %v1472_v27 = vld [vmem:[#allocation3 + $0xb0] sm:$0xff]   ;;  %v1476_v31 = vld [vmem:[#allocation3 + $0xb8] sm:$0xff]   ;;  %v56_v34 = vld [vmem:[%s1776_s0 + $0x8] sm:$0xff]  ;;  %v1165_v35 = vcombine.low %v55_v32, %v59_v33  ;;  %v1166_v36 = vcombine.high %v55_v32, %v59_v33 }
  0x1e   :  { %1292 = vmatpush3.bf16.msra.mxu1 %v1456_v11  ;;  %1271 = vmatprep.subr.bf16.mxu0 %v1457_v12  ;;  %v60_v37 = vld [vmem:[%s1776_s0 + $0x28] sm:$0xff]  ;;  %v1477_v40 = vld [vmem:[#allocation3 + $0x140] sm:$0xff]   ;;  %v1485_v48 = vld [vmem:[#allocation3 + $0x150] sm:$0xff]  }
  0x1f   :  { %1293 = vmatprep.subr.bf16.mxu1 %v1458_v13  ;;  %v1167_v38 = vcombine.low %v56_v34, %v60_v37  ;;  %v1168_v39 = vcombine.high %v56_v34, %v60_v37  ;;  %647 = vmatprep.mubr.bf16.mxu0 %v1166_v36  ;;  %v1478_v41 = vld [vmem:[#allocation3 + $0x1c0] sm:$0xff]   ;;  %v1481_v44 = vld [vmem:[#allocation3 + $0x148] sm:$0xff]   ;;  %v1486_v49 = vld [vmem:[#allocation3 + $0x1d0] sm:$0xff]  }
  0x20   :  { %v1479_v42 = vld [vmem:[#allocation3 + $0x100] sm:$0xff]   ;;  %v1482_v45 = vld [vmem:[#allocation3 + $0x1c8] sm:$0xff]   ;;  %v1487_v50 = vld [vmem:[#allocation3 + $0x110] sm:$0xff]  }
  0x21   :  { %1272 = vmatpush3.bf16.msra.mxu0 %v1459_v14  ;;  %688 = vmatprep.mubr.bf16.mxu1 %v1168_v39  ;;  %v1480_v43 = vld [vmem:[#allocation3 + $0x180] sm:$0xff]   ;;  %v1483_v46 = vld [vmem:[#allocation3 + $0x108] sm:$0xff]   ;;  %v1488_v51 = vld [vmem:[#allocation3 + $0x190] sm:$0xff]  }
  0x22   :  { %1294 = vmatpush3.bf16.msra.mxu1 %v1460_v15  ;;  %1273 = vmatprep.subr.bf16.mxu0 %v1461_v16  ;;  %v1484_v47 = vld [vmem:[#allocation3 + $0x188] sm:$0xff]   ;;  %v1489_v52 = vld [vmem:[#allocation3 + $0x158] sm:$0xff]   ;;  %v1493_v56 = vld [vmem:[#allocation3 + $0x160] sm:$0xff]  }
  0x23   :  { %1295 = vmatprep.subr.bf16.mxu1 %v1462_v17  ;;  %v1490_v53 = vld [vmem:[#allocation3 + $0x1d8] sm:$0xff]   ;;  %v1494_v57 = vld [vmem:[#allocation3 + $0x1e0] sm:$0xff]   ;;  %v1497_v60 = vld [vmem:[#allocation3 + $0x168] sm:$0xff]   ;;  %v1568_v17 = vmov 0.0  }
  0x24   :  { %v1491_v54 = vld [vmem:[#allocation3 + $0x118] sm:$0xff]   ;;  %v1495_v58 = vld [vmem:[#allocation3 + $0x120] sm:$0xff]   ;;  %v1498_v61 = vld [vmem:[#allocation3 + $0x1e8] sm:$0xff]  }
  0x25   :  { %1274 = vmatpush3.bf16.msra.mxu0 %v1463_v18  ;;  %v1492_v55 = vld [vmem:[#allocation3 + $0x198] sm:$0xff]   ;;  %v1496_v59 = vld [vmem:[#allocation3 + $0x1a0] sm:$0xff]   ;;  %v1499_v62 = vld [vmem:[#allocation3 + $0x128] sm:$0xff]  }
  0x26   :  { %1296 = vmatpush3.bf16.msra.mxu1 %v1464_v19  ;;  %1275 = vmatprep.subr.bf16.mxu0 %v1465_v20  ;;  %v1500_v63 = vld [vmem:[#allocation3 + $0x1a8] sm:$0xff]   ;;  %v1501_v0 = vld [vmem:[#allocation3 + $0x170] sm:$0xff]   ;;  %v1505_v4 = vld [vmem:[#allocation3 + $0x178] sm:$0xff]  }
  0x27   :  { %1297 = vmatprep.subr.bf16.mxu1 %v1466_v21  ;;  %v1502_v1 = vld [vmem:[#allocation3 + $0x1f0] sm:$0xff]   ;;  %v1506_v5 = vld [vmem:[#allocation3 + $0x1f8] sm:$0xff]   ;;  %v1509_v16 = vld [vmem:[%s1779_s3] sm:$0xff]  }
  0x28   :  { %v1503_v2 = vld [vmem:[#allocation3 + $0x130] sm:$0xff]   ;;  %v1507_v6 = vld [vmem:[#allocation3 + $0x138] sm:$0xff]   ;;  %v1510_v18 = vld [vmem:[%s1779_s3 + $0x8] sm:$0xff]  }
  0x29   :  { %1276 = vmatpush3.bf16.msra.mxu0 %v1467_v22  ;;  %v1504_v3 = vld [vmem:[#allocation3 + $0x1b0] sm:$0xff]   ;;  %v1508_v7 = vld [vmem:[#allocation3 + $0x1b8] sm:$0xff]   ;;  %v1513_v21 = vld [vmem:[%s1779_s3 + $0x20] sm:$0xff]  }
  0x2a   :  { %1298 = vmatpush3.bf16.msra.mxu1 %v1468_v23  ;;  %1277 = vmatprep.subr.bf16.mxu0 %v1469_v24  ;;  %v57_v8 = vld [vmem:[%s1776_s0 + $0x10] sm:$0xff]  ;;  %v58_v12 = vld [vmem:[%s1776_s0 + $0x18] sm:$0xff]  ;;  %v1514_v22 = vld [vmem:[%s1779_s3 + $0x28] sm:$0xff]  }
  0x2b   :  { %1299 = vmatprep.subr.bf16.mxu1 %v1470_v25  ;;  %v61_v9 = vld [vmem:[%s1776_s0 + $0x30] sm:$0xff]  ;;  %v62_v13 = vld [vmem:[%s1776_s0 + $0x38] sm:$0xff]  ;;  %v1517_v25 = vld [vmem:[%s1781_s5] sm:$0xff]  }
  0x2c   :  { %v1169_v10 = vcombine.low %v57_v8, %v61_v9  ;;  %v1170_v11 = vcombine.high %v57_v8, %v61_v9  ;;  %v1171_v14 = vcombine.low %v58_v12, %v62_v13  ;;  %v1172_v15 = vcombine.high %v58_v12, %v62_v13  ;;  %v1511_v19 = vld [vmem:[%s1779_s3 + $0x10] sm:$0xff]   ;;  %v1512_v20 = vld [vmem:[%s1779_s3 + $0x18] sm:$0xff]   ;;  %v1526_v8 = vld [vmem:[%s1783_s7 + $0x8] sm:$0xff]  }
  0x2d   :  { %1278 = vmatpush3.bf16.msra.mxu0 %v1471_v26  ;;  %v1515_v23 = vld [vmem:[%s1779_s3 + $0x30] sm:$0xff]   ;;  %v1516_v24 = vld [vmem:[%s1779_s3 + $0x38] sm:$0xff]   ;;  %v1518_v26 = vld [vmem:[%s1781_s5 + $0x8] sm:$0xff]  }
  0x2e   :  { %1300 = vmatpush3.bf16.msra.mxu1 %v1472_v27  ;;  %1279 = vmatprep.subr.bf16.mxu0 %v1473_v28  ;;  %v1519_v27 = vld [vmem:[%s1781_s5 + $0x10] sm:$0xff]   ;;  %v1520_v28 = vld [vmem:[%s1781_s5 + $0x18] sm:$0xff]   ;;  %v1238_v12 = vld [vmem:[%s1780_s4] ss:$0 sm:$0xff] }
  0x2f   :  { %1301 = vmatprep.subr.bf16.mxu1 %v1474_v29  ;;  %v1521_v29 = vld [vmem:[%s1781_s5 + $0x20] sm:$0xff]   ;;  %v1527_v9 = vld [vmem:[%s1783_s7 + $0x10] sm:$0xff]  }
  0x31   :  { %1280 = vmatpush3.bf16.msra.mxu0 %v1475_v30 }
  0x32   :  { %1302 = vmatpush3.bf16.msra.mxu1 %v1476_v31  ;;  %1309 = vmatprep.subr.bf16.mxu0 %v1477_v40 }
  0x33   :  { %1331 = vmatprep.subr.bf16.mxu1 %v1478_v41 }
  0x34   :  { %648 = vmatmul.mubr.bf16.vlgmr.msra.gmra.mrb[0].mxu0 %v1165_v35 }
  0x35   :  { %689 = vmatmul.mubr.bf16.vlgmr.msra.gmra.mrb[0].mxu1 %v1167_v38  ;;  %1310 = vmatpush3.bf16.msra.mxu0 %v1479_v42 }
  0x36   :  { %1332 = vmatpush3.bf16.msra.mxu1 %v1480_v43  ;;  %1311 = vmatprep.subr.bf16.mxu0 %v1481_v44 }
  0x37   :  { %1333 = vmatprep.subr.bf16.mxu1 %v1482_v45  ;;  %729 = vmatprep.mubr.bf16.mxu0 %v1170_v11  ;;  %v1529_v11 = vld [vmem:[%s1783_s7 + $0x20] sm:$0xff]  }
  0x38   :  { %770 = vmatprep.mubr.bf16.mxu1 %v1172_v15 }
  0x39   :  { %1312 = vmatpush3.bf16.msra.mxu0 %v1483_v46 }
  0x3a   :  { %1334 = vmatpush3.bf16.msra.mxu1 %v1484_v47  ;;  %1313 = vmatprep.subr.bf16.mxu0 %v1485_v48 }
  0x3b   :  { %1335 = vmatprep.subr.bf16.mxu1 %v1486_v49 }
  0x3d   :  { %1314 = vmatpush3.bf16.msra.mxu0 %v1487_v50 }
  0x3e   :  { %1336 = vmatpush3.bf16.msra.mxu1 %v1488_v51  ;;  %1315 = vmatprep.subr.bf16.mxu0 %v1489_v52 }
  0x3f   :  { %1337 = vmatprep.subr.bf16.mxu1 %v1490_v53 }
  0x41   :  { %1316 = vmatpush3.bf16.msra.mxu0 %v1491_v54 }
  0x42   :  { %1338 = vmatpush3.bf16.msra.mxu1 %v1492_v55  ;;  %1317 = vmatprep.subr.bf16.mxu0 %v1493_v56  ;;  %v1237_v56 = vld [vmem:[%s1778_s2] ss:$0 sm:$0xff] }
  0x43   :  { %1339 = vmatprep.subr.bf16.mxu1 %v1494_v57 }
  0x45   :  { %1318 = vmatpush3.bf16.msra.mxu0 %v1495_v58 }
  0x46   :  { %1340 = vmatpush3.bf16.msra.mxu1 %v1496_v59  ;;  %1319 = vmatprep.subr.bf16.mxu0 %v1497_v60 }
  0x47   :  { %1341 = vmatprep.subr.bf16.mxu1 %v1498_v61 }
  0x49   :  { %1320 = vmatpush3.bf16.msra.mxu0 %v1499_v62 }
  0x4a   :  { %1342 = vmatpush3.bf16.msra.mxu1 %v1500_v63  ;;  %1321 = vmatprep.subr.bf16.mxu0 %v1501_v0 }
  0x4b   :  { %1343 = vmatprep.subr.bf16.mxu1 %v1502_v1 }
  0x4d   :  { %1322 = vmatpush3.bf16.msra.mxu0 %v1503_v2 }
  0x4e   :  { %1344 = vmatpush3.bf16.msra.mxu1 %v1504_v3  ;;  %1323 = vmatprep.subr.bf16.mxu0 %v1505_v4  ;;  %v1522_v4 = vld [vmem:[%s1781_s5 + $0x28] sm:$0xff]  }
  0x4f   :  { %1345 = vmatprep.subr.bf16.mxu1 %v1506_v5  ;;  %v1523_v5 = vld [vmem:[%s1781_s5 + $0x30] sm:$0xff]  }
  0x51   :  { %1324 = vmatpush3.bf16.msra.mxu0 %v1507_v6  ;;  %v1524_v6 = vld [vmem:[%s1781_s5 + $0x38] sm:$0xff]  }
  0x52   :  { %1346 = vmatpush3.bf16.msra.mxu1 %v1508_v7  ;;  %1380 = vmatprep.subr.bf16.mxu0 %v1568_v17  ;;  %v1525_v7 = vld [vmem:[%s1783_s7] sm:$0xff]  }
  0x53   :  { %1400 = vmatprep.subr.bf16.mxu1 %v1568_v17 }
  0x54   :  { %730 = vmatmul.mubr.bf16.vlgmr.msra.gmra.mrb[4].mxu0 %v1169_v10  ;;  %v1528_v10 = vld [vmem:[%s1783_s7 + $0x18] sm:$0xff]  }
  0x55   :  { %771 = vmatmul.mubr.bf16.vlgmr.msra.gmra.mrb[4].mxu1 %v1171_v14  ;;  %1381 = vmatpush3.bf16.msra.mxu0 %v1509_v16 }
  0x56   :  { %1382 = vmatprep.subr.bf16.mxu0 %v1568_v17  ;;  %1396 = vmatprep.mubr.msk.bf16.mxu0 %vm1569_vm0, %v1568_v17 }
  0x57   :  { %1416 = vmatprep.mubr.msk.bf16.mxu1 %vm1569_vm0, %v1568_v17  ;;  %1401 = vmatpush3.bf16.msra.mxu1 %v1517_v25  ;;  %v1530_v25 = vld [vmem:[%s1783_s7 + $0x28] sm:$0xff]  }
  0x58   :  { %1402 = vmatprep.subr.bf16.mxu1 %v1568_v17 }
  0x59   :  { %1383 = vmatpush3.bf16.msra.mxu0 %v1510_v18 }
  0x5a   :  { %1384 = vmatprep.subr.bf16.mxu0 %v1568_v17 }
  0x5b   :  { %1403 = vmatpush3.bf16.msra.mxu1 %v1518_v26  ;;  %v1531_v26 = vld [vmem:[%s1783_s7 + $0x30] sm:$0xff]  }
  0x5c   :  { %1404 = vmatprep.subr.bf16.mxu1 %v1568_v17 }
  0x5d   :  { %1385 = vmatpush3.bf16.msra.mxu0 %v1511_v19 }
  0x5e   :  { %1386 = vmatprep.subr.bf16.mxu0 %v1568_v17 }
  0x5f   :  { %1405 = vmatpush3.bf16.msra.mxu1 %v1519_v27  ;;  %v1532_v27 = vld [vmem:[%s1783_s7 + $0x38] sm:$0xff]  }
  0x60   :  { %1406 = vmatprep.subr.bf16.mxu1 %v1568_v17 }
  0x61   :  { %1387 = vmatpush3.bf16.msra.mxu0 %v1512_v20 }
  0x62   :  { %1388 = vmatprep.subr.bf16.mxu0 %v1568_v17 }
  0x63   :  { %1407 = vmatpush3.bf16.msra.mxu1 %v1520_v28  ;;  %v1247_v28 = vld [vmem:[%s1782_s6] ss:$0 sm:$0xff] }
  0x64   :  { %1408 = vmatprep.subr.bf16.mxu1 %v1568_v17 }
  0x65   :  { %1389 = vmatpush3.bf16.msra.mxu0 %v1513_v21 }
  0x66   :  { %1390 = vmatprep.subr.bf16.mxu0 %v1568_v17 }
  0x67   :  { %1409 = vmatpush3.bf16.msra.mxu1 %v1521_v29 }
  0x68   :  { %1410 = vmatprep.subr.bf16.mxu1 %v1568_v17 }
  0x69   :  { %1391 = vmatpush3.bf16.msra.mxu0 %v1514_v22 }
  0x6a   :  { %1392 = vmatprep.subr.bf16.mxu0 %v1568_v17 }
  0x6b   :  { %1411 = vmatpush3.bf16.msra.mxu1 %v1522_v4 }
  0x6c   :  { %1412 = vmatprep.subr.bf16.mxu1 %v1568_v17 }
  0x6d   :  { %1393 = vmatpush3.bf16.msra.mxu0 %v1515_v23 }
  0x6e   :  { %1394 = vmatprep.subr.bf16.mxu0 %v1568_v17 }
  0x6f   :  { %1413 = vmatpush3.bf16.msra.mxu1 %v1523_v5 }
  0x70   :  { %1414 = vmatprep.subr.bf16.mxu1 %v1568_v17 }
  0x71   :  { %1395 = vmatpush3.bf16.msra.mxu0 %v1516_v24 }
  0x72   :  { %1420 = vmatprep.subr.bf16.mxu0 %v1568_v17 }
  0x73   :  { %1415 = vmatpush3.bf16.msra.mxu1 %v1524_v6 }
 0x107   :  { %v1281_v30 = vpop.f32.mrb[0].mxu0 }
 0x108   :  { %v1303_v31 = vpop.f32.mrb[0].mxu1  ;;  %v1282_v32 = vpop.f32.mrb[1].mxu0 }
 0x109   :  { %v1283_v33 = vadd.f32 %v1282_v32, %v1281_v30  ;;  %v1304_v34 = vpop.f32.mrb[1].mxu1  ;;  %v1284_v35 = vpop.f32.mrb[2].mxu0 }
 0x10a   :  { %v1305_v36 = vadd.f32 %v1304_v34, %v1303_v31  ;;  %v1306_v37 = vpop.f32.mrb[2].mxu1  ;;  %v1285_v38 = vpop.f32.mrb[3].mxu0 }
 0x10b   :  { %v1286_v39 = vadd.f32 %v1285_v38, %v1284_v35  ;;  %v1307_v40 = vpop.f32.mrb[3].mxu1 }
 0x10c   :  { %v691_v41 = vadd.f32 %v1305_v36, %v1283_v33  ;;  %v1308_v42 = vadd.f32 %v1307_v40, %v1306_v37 }
 0x10e   :  { %v694_v43 = vadd.f32 %v1308_v42, %v1286_v39  ;;  %v1256_v39 = vld [vmem:[%s1784_s8] ss:$0 sm:$0xff] }
 0x127   :  { %v1325_v44 = vpop.f32.mrb[4].mxu0 }
 0x128   :  { %v1347_v45 = vpop.f32.mrb[4].mxu1  ;;  %v1326_v46 = vpop.f32.mrb[5].mxu0 }
 0x129   :  { %v1327_v47 = vadd.f32 %v1326_v46, %v1325_v44  ;;  %v1348_v48 = vpop.f32.mrb[5].mxu1  ;;  %v1328_v49 = vpop.f32.mrb[6].mxu0 }
 0x12a   :  { %v1349_v50 = vadd.f32 %v1348_v48, %v1347_v45  ;;  %v1350_v51 = vpop.f32.mrb[6].mxu1  ;;  %v1329_v52 = vpop.f32.mrb[7].mxu0 }
 0x12b   :  { %v732_v53 = vadd.f32 %v1327_v47, %v691_v41  ;;  %v1330_v54 = vadd.f32 %v1329_v52, %v1328_v49  ;;  %v1351_v55 = vpop.f32.mrb[7].mxu1 }
 0x12c   :  { %v1352_v57 = vadd.f32 %v1351_v55, %v1350_v51 }
 0x12d   :  { %v773_v58 = vadd.f32 %v1349_v50, %v732_v53  ;;  %v735_v59 = vadd.f32 %v1330_v54, %v694_v43 }
 0x12f   :  { %v795_v60 = vadd.f32 %v1237_v56, %v773_v58  ;;  %v776_v61 = vadd.f32 %v1352_v57, %v735_v59 }
 0x131   :  { %v797_v62 = vmul.f32 0.01, %v795_v60  ;;  %v796_v63 = vadd.f32 %v1237_v56, %v776_v61 }
 0x133   :  { %v798_v0 = vmul.f32 0.01, %v796_v63  ;;  %v799_v1 = vmax.f32 %v795_v60, %v797_v62 }
 0x135   :  { %v800_v2 = vmax.f32 %v796_v63, %v798_v0 }
 0x137   :  { %v801_v3 = vpack.c.bf16 %v800_v2, %v799_v1 }
 0x139   :  { %1397 = vmatmul.mubr.bf16.vlgmr.msra.gmra.mrb[8].mxu0 %v801_v3 }
 0x13a   :  { %1436 = vmatprep.mubr.msk.bf16.mxu0 %vm1569_vm0, %v1568_v17  ;;  %1421 = vmatpush3.bf16.msra.mxu0 %v1525_v7 }
 0x13b   :  { %1422 = vmatprep.subr.bf16.mxu0 %v1568_v17 }
 0x13e   :  { %1423 = vmatpush3.bf16.msra.mxu0 %v1526_v8 }
 0x13f   :  { %1424 = vmatprep.subr.bf16.mxu0 %v1568_v17 }
 0x142   :  { %1425 = vmatpush3.bf16.msra.mxu0 %v1527_v9 }
 0x143   :  { %1426 = vmatprep.subr.bf16.mxu0 %v1568_v17 }
 0x146   :  { %1427 = vmatpush3.bf16.msra.mxu0 %v1528_v10 }
 0x147   :  { %1428 = vmatprep.subr.bf16.mxu0 %v1568_v17 }
 0x14a   :  { %1429 = vmatpush3.bf16.msra.mxu0 %v1529_v11 }
 0x14b   :  { %1430 = vmatprep.subr.bf16.mxu0 %v1568_v17 }
 0x14e   :  { %1431 = vmatpush3.bf16.msra.mxu0 %v1530_v25 }
 0x14f   :  { %1432 = vmatprep.subr.bf16.mxu0 %v1568_v17 }
 0x152   :  { %1433 = vmatpush3.bf16.msra.mxu0 %v1531_v26 }
 0x153   :  { %1434 = vmatprep.subr.bf16.mxu0 %v1568_v17 }
 0x156   :  { %1435 = vmatpush3.bf16.msra.mxu0 %v1532_v27 }
 0x20c   :  { %v907_v13 = vpop.f32.mrb[8].mxu0 }
 0x20d   :  { %v908_v14 = vadd.f32 %v1238_v12, %v907_v13  ;;  %v1398_v15 = vpop.f32.mrb[9].mxu0 }
 0x20e   :  { %v910_v16 = vpop.f32.mrb[10].mxu0 }
 0x20f   :  { %v914_v18 = vmul.f32 0.01, %v908_v14  ;;  %v911_v19 = vadd.f32 %v1238_v12, %v910_v16  ;;  %v1399_v20 = vpop.f32.mrb[11].mxu0 }
 0x211   :  { %v915_v21 = vmul.f32 0.01, %v911_v19  ;;  %v916_v22 = vmax.f32 %v908_v14, %v914_v18 }
 0x213   :  { %v917_v23 = vmax.f32 %v911_v19, %v915_v21 }
 0x215   :  { %v918_v24 = vpack.c.bf16 %v917_v23, %v916_v22 }
 0x217   :  { %1417 = vmatmul.mubr.bf16.vlgmr.msra.gmra.mrb[8].mxu1 %v918_v24 }
 0x2ea   :  { %v1024_v29 = vpop.f32.mrb[8].mxu1 }
 0x2eb   :  { %v1025_v30 = vadd.f32 %v1247_v28, %v1024_v29  ;;  %v1418_v31 = vpop.f32.mrb[9].mxu1 }
 0x2ec   :  { %v1027_v32 = vpop.f32.mrb[10].mxu1 }
 0x2ed   :  { %v1031_v33 = vmul.f32 0.01, %v1025_v30  ;;  %v1028_v34 = vadd.f32 %v1247_v28, %v1027_v32  ;;  %v1419_v35 = vpop.f32.mrb[11].mxu1 }
 0x2ef   :  { %v1032_v36 = vmul.f32 0.01, %v1028_v34  ;;  %v1033_v37 = vmax.f32 %v1025_v30, %v1031_v33 }
 0x2f1   :  { %v1034_v38 = vmax.f32 %v1028_v34, %v1032_v36 }
 0x2f3   :  { %v1035_v17 = vpack.c.bf16 %v1034_v38, %v1033_v37 }
 0x2f5   :  { %1437 = vmatmul.mubr.bf16.vlgmr.msra.gmra.mrb[12].mxu0 %v1035_v17 }
 0x3c8   :  { %v1141_v40 = vpop.f32.mrb[12].mxu0 }
 0x3c9   :  { %v1142_v41 = vadd.f32 %v1256_v39, %v1141_v40  ;;  %v1438_v42 = vpop.f32.mrb[13].mxu0 }
 0x3ca   :  { %v1144_v43 = vpop.f32.mrb[14].mxu0 }
 0x3cb   :  { %v1148_v44 = vsub.f32 0.0, %v1142_v41  ;;  %v1145_v45 = vadd.f32 %v1256_v39, %v1144_v43  ;;  %v1439_v46 = vpop.f32.mrb[15].mxu0 }
 0x3cd   :  { %v1150_v47 = vmul.f32 1.442695, %v1148_v44  ;;  %v1149_v48 = vsub.f32 0.0, %v1145_v45 }
 0x3cf   :  { %1533 = vpow2.f32 %v1150_v47  ;;  %v1152_v49 = vmul.f32 1.442695, %v1149_v48 }
 0x3d1   :  { %1535 = vpow2.f32 %v1152_v49 }
 0x3d9   :  { %v1534_v50 = vpop.eup %1533 }
 0x3da   :  { %v1154_v51 = vadd.f32 1.0, %v1534_v50 }
 0x3db   :  { %v1536_v52 = vpop.eup %1535 }
 0x3dc   :  { %1537 = vrcp.f32 %v1154_v51  ;;  %v1155_v53 = vadd.f32 1.0, %v1536_v52 }
 0x3de   :  { %1539 = vrcp.f32 %v1155_v53 }
 0x3e6   :  { %v1538_v54 = vpop.eup %1537 }
 0x3e7   :  { %1158 = vst [vmem:[%s1785_s9] sm:$0xff] %v1538_v54 }
 0x3e8   :  { %v1540_v55 = vpop.eup %1539 }
 0x3e9   :  { %1159 = vst [vmem:[%s1785_s9 + $0x8] sm:$0xff] %v1540_v55 }
 0x3ea   :  { %1164 = vsyncpa [#allocation4], 1 }

</bundles_post_ra>
